<compile_context>
chip_gen: v5e
topology: v5e:2x2
jax: 0.10.0
libtpu: 0.0.40
codegen_flags: <defaults>
</compile_context>

<pallas_src>
import math
import jax
import jax.numpy as jnp
from jax import lax
from jax.experimental import pallas as pl
from jax.experimental.pallas import tpu as pltpu

# ---- problem sizes (small, consistent with the module) ----
B, S, D = 2, 8, 32          # batch, seq, input_dim (= embed_dim)
H = 4                       # num_heads
HD = D // H                 # head_dim = 8
FF = 64                     # dim_feedforward
EPS = 1e-5                  # nn.LayerNorm default eps

# ---- packed slab layout (row offsets; weight blocks are 8-row aligned) ----
R_WQKV = 0                  # (D, 3D)  head-contiguous [Q|K|V], q-scale folded
R_WO = R_WQKV + D           # (D, D)
R_W1 = R_WO + D             # (D, FF)
R_W2 = R_W1 + D             # (FF, D)
R_P = R_W2 + FF             # 160: small-parameter rows start here
P_BQKV = R_P + 0            # (3D,)  q-part pre-scaled
P_BO = R_P + 1
P_B1 = R_P + 2
P_B2 = R_P + 3
P_G1 = R_P + 4
P_BE1 = R_P + 5
P_G2 = R_P + 6
P_BE2 = R_P + 7
N_ROWS = R_P + 8            # 168
PAD_ROWS = 176              # pad total rows to a multiple of 8
PC = 3 * D                  # packed column width = 96


def encoder_block_kernel(x_ref, w_ref, o_ref):
    f32 = jnp.float32
    x = x_ref[...].astype(f32)                                    # (B*S, D)

    # ---- unpack parameters (static slices of the single packed slab) ----
    wqkv = w_ref[R_WQKV:R_WQKV + D, :3 * D]                        # (D, 3D)
    wo = w_ref[R_WO:R_WO + D, :D]
    w1 = w_ref[R_W1:R_W1 + D, :FF]
    w2 = w_ref[R_W2:R_W2 + FF, :D]
    bqkv = w_ref[P_BQKV:P_BQKV + 1, :3 * D]
    bo = w_ref[P_BO:P_BO + 1, :D]
    b1 = w_ref[P_B1:P_B1 + 1, :FF]
    b2 = w_ref[P_B2:P_B2 + 1, :D]
    g1 = w_ref[P_G1:P_G1 + 1, :D]
    be1 = w_ref[P_BE1:P_BE1 + 1, :D]
    g2 = w_ref[P_G2:P_G2 + 1, :D]
    be2 = w_ref[P_BE2:P_BE2 + 1, :D]

    # ---- fused QKV projection over all B*S tokens: one MXU matmul ----
    qkv = jnp.dot(x, wqkv, preferred_element_type=f32) + bqkv      # (B*S, 3D)

    # ---- scaled dot-product attention, per (batch, head), static unrolled ----
    # TODO(synk): optional attention-mask path (mask==0 -> -9e15) not wired;
    # forward is used with mask=None as in the reference module.
    dims_qk = (((1,), (1,)), ((), ()))   # contract last dims: q @ k^T w/o transpose
    batch_rows = []
    for b in range(B):
        r0 = b * S
        ob = jnp.zeros((S, D), f32)
        for h in range(H):
            c0 = h * HD
            qh = qkv[r0:r0 + S, c0:c0 + HD]                        # (S, HD)
            kh = qkv[r0:r0 + S, D + c0:D + c0 + HD]
            vh = qkv[r0:r0 + S, 2 * D + c0:2 * D + c0 + HD]
            logits = lax.dot_general(qh, kh, dims_qk,
                                     preferred_element_type=f32)   # (S, S)
            m = jnp.max(logits, axis=-1, keepdims=True)
            p = jnp.exp(logits - m)
            attn = p * pl.reciprocal(jnp.sum(p, axis=-1, keepdims=True),
                                     approx=True)
            ctx = jnp.dot(attn, vh, preferred_element_type=f32)    # (S, HD)
            # accumulate o_proj per head (avoids lane-concat of head outputs);
            # W_o row slice is sublane-aligned (offsets 0/8/16/24)
            ob = ob + jnp.dot(ctx, wo[c0:c0 + HD, :],
                              preferred_element_type=f32)          # (S, D)
        batch_rows.append(ob)
    attn_out = jnp.concatenate(batch_rows, axis=0) + bo            # (B*S, D)

    # ---- residual + LayerNorm 1 (dropout p=0.0 -> identity) ----
    x1 = x + attn_out
    mu1 = jnp.mean(x1, axis=-1, keepdims=True)
    var1 = jnp.mean((x1 - mu1) ** 2, axis=-1, keepdims=True)
    x1n = (x1 - mu1) * lax.rsqrt(var1 + EPS) * g1 + be1

    # ---- feed-forward (Linear -> ReLU -> Linear) ----
    h1 = jnp.maximum(jnp.dot(x1n, w1, preferred_element_type=f32) + b1, 0.0)
    ff = jnp.dot(h1, w2, preferred_element_type=f32) + b2

    # ---- residual + LayerNorm 2 ----
    x2 = x1n + ff
    mu2 = jnp.mean(x2, axis=-1, keepdims=True)
    var2 = jnp.mean((x2 - mu2) ** 2, axis=-1, keepdims=True)
    out = (x2 - mu2) * lax.rsqrt(var2 + EPS) * g2 + be2

    o_ref[...] = out.astype(o_ref.dtype)


def encoder_block(x, w_pack):
    """x: (B, S, D) -> (B, S, D). Single kernel invocation, no grid.

    Note: on v7x (2 TCs/chip) a grid=(B,) + dimension_semantics=("parallel",)
    variant could shard the batch across cores; at this size the single-step
    version avoids the duplicated prologue on single-TC v5e/v6e.
    """
    Bx, Sx, Dx = x.shape
    xf = x.reshape(Bx * Sx, Dx)       # free, row-major identical
    vmem = pl.BlockSpec(memory_space=pltpu.MemorySpace.VMEM)
    out = pl.pallas_call(
        encoder_block_kernel,
        out_shape=jax.ShapeDtypeStruct((Bx * Sx, Dx), x.dtype),
        in_specs=[vmem, vmem],
        out_specs=vmem,
    )(xf, w_pack)
    return out.reshape(Bx, Sx, Dx)


# -------------------- parameter init (PyTorch reference layout) --------------
def xavier_uniform(key, fan_in, fan_out):
    bound = math.sqrt(6.0 / (fan_in + fan_out))
    return jax.random.uniform(key, (fan_in, fan_out), jnp.float32,
                              minval=-bound, maxval=bound)


def init_params(key):
    k = jax.random.split(key, 6)
    # qkv_proj / o_proj: xavier_uniform weights, zero bias (as in _reset_parameters)
    wqkv = xavier_uniform(k[0], D, 3 * D)          # interleaved per-head [q|k|v]
    bqkv = jnp.zeros((3 * D,), jnp.float32)
    wo = xavier_uniform(k[1], D, D)
    bo = jnp.zeros((D,), jnp.float32)
    # feed-forward linears (deterministic synthetic init)
    w1 = xavier_uniform(k[2], D, FF)
    b1 = 0.01 * jax.random.normal(k[3], (FF,), jnp.float32)
    w2 = xavier_uniform(k[4], FF, D)
    b2 = 0.01 * jax.random.normal(k[5], (D,), jnp.float32)
    # layernorms: gamma=1, beta=0 (nn.LayerNorm default init)
    g1 = jnp.ones((D,), jnp.float32)
    be1 = jnp.zeros((D,), jnp.float32)
    g2 = jnp.ones((D,), jnp.float32)
    be2 = jnp.zeros((D,), jnp.float32)
    return (wqkv, bqkv, wo, bo, g1, be1, w1, b1, w2, b2, g2, be2)


def pack_params(params):
    """Wrapper-side (free) repacking: de-interleave heads into head-contiguous
    [Q|K|V] columns, fold 1/sqrt(HD) into the Q columns/bias, and pack all 12
    parameters into ONE (PAD_ROWS, PC) slab to cut DMA descriptor count."""
    (wqkv, bqkv, wo, bo, g1, be1, w1, b1, w2, b2, g2, be2) = params
    scale = 1.0 / math.sqrt(HD)

    # Reference layout: column f = h*3*HD + t*HD + hd  (t in {q,k,v}).
    wqkv4 = wqkv.reshape(D, H, 3, HD)
    bqkv3 = bqkv.reshape(H, 3, HD)
    wq = wqkv4[:, :, 0, :].reshape(D, D) * scale    # head-contiguous columns
    wk = wqkv4[:, :, 1, :].reshape(D, D)
    wv = wqkv4[:, :, 2, :].reshape(D, D)
    bq = bqkv3[:, 0, :].reshape(D) * scale
    bk = bqkv3[:, 1, :].reshape(D)
    bv = bqkv3[:, 2, :].reshape(D)
    wqkv_p = jnp.concatenate([wq, wk, wv], axis=1)  # (D, 3D)
    bqkv_p = jnp.concatenate([bq, bk, bv], axis=0)  # (3D,)

    def padc(w):
        return jnp.pad(w, ((0, 0), (0, PC - w.shape[1])))

    def padrow(v):
        return jnp.pad(v, (0, PC - v.shape[0]))[None, :]

    w_pack = jnp.concatenate(
        [padc(wqkv_p), padc(wo), padc(w1), padc(w2),
         padrow(bqkv_p), padrow(bo), padrow(b1), padrow(b2),
         padrow(g1), padrow(be1), padrow(g2), padrow(be2)],
        axis=0)
    assert w_pack.shape[0] == N_ROWS
    w_pack = jnp.pad(w_pack, ((0, PAD_ROWS - w_pack.shape[0]), (0, 0)))
    assert w_pack.shape == (PAD_ROWS, PC)
    return w_pack


# -------------------- pure-JAX reference (mirrors the PyTorch module) --------
def _layer_norm_ref(x, g, b):
    mu = jnp.mean(x, axis=-1, keepdims=True)
    var = jnp.mean((x - mu) ** 2, axis=-1, keepdims=True)
    return (x - mu) * lax.rsqrt(var + EPS) * g + b


def encoder_block_ref(x, params):
    (wqkv, bqkv, wo, bo, g1, be1, w1, b1, w2, b2, g2, be2) = params
    Bx, Sx, Dx = x.shape
    qkv = x @ wqkv + bqkv                                        # (B,S,3D)
    qkv = qkv.reshape(Bx, Sx, H, 3 * HD).transpose(0, 2, 1, 3)   # (B,H,S,3HD)
    q, k, v = jnp.split(qkv, 3, axis=-1)
    logits = jnp.einsum('bhqd,bhkd->bhqk', q, k) / math.sqrt(HD)
    attn = jax.nn.softmax(logits, axis=-1)
    vals = jnp.einsum('bhqk,bhkd->bhqd', attn, v)
    vals = vals.transpose(0, 2, 1, 3).reshape(Bx, Sx, Dx)
    o = vals @ wo + bo
    x1 = _layer_norm_ref(x + o, g1, be1)
    ffn = jax.nn.relu(x1 @ w1 + b1) @ w2 + b2
    return _layer_norm_ref(x1 + ffn, g2, be2)


if __name__ == "__main__":
    key = jax.random.PRNGKey(0)
    kx, kp = jax.random.split(key)
    x = jax.random.normal(kx, (B, S, D), jnp.float32)
    params = init_params(kp)
    w_pack = pack_params(params)

    out = encoder_block(x, w_pack)
    out = jax.block_until_ready(out)

    assert out.shape == (B, S, D)
    assert bool(jnp.all(jnp.isfinite(out)))

    ref = encoder_block_ref(x, params)
    err = float(jnp.max(jnp.abs(out - ref)))
    assert err < 1e-2, f"max abs err vs reference: {err}"

    print("KERNEL_OK")
</pallas_src>

<mosaic_0001>
module attributes {stable_mosaic.version = 11 : i64} {
  func.func @encoder_block_kernel(%arg0: memref<16x32xf32, #tpu.memory_space<vmem>>, %arg1: memref<176x96xf32, #tpu.memory_space<vmem>>, %arg2: memref<16x32xf32, #tpu.memory_space<vmem>>) attributes {dimension_semantics = [], scalar_prefetch = 0 : i64, scratch_operands = 0 : i64, tpu.core_type = #tpu.core_type<tc>} {
    %c0 = arith.constant 0 : index
    %c0_0 = arith.constant 0 : index
    %0 = vector.load %arg0[%c0, %c0_0] : memref<16x32xf32, #tpu.memory_space<vmem>>, vector<16x32xf32>
    %c0_1 = arith.constant 0 : index
    %c0_2 = arith.constant 0 : index
    %1 = vector.load %arg1[%c0_1, %c0_2] : memref<176x96xf32, #tpu.memory_space<vmem>>, vector<32x96xf32>
    %c32 = arith.constant 32 : index
    %c0_3 = arith.constant 0 : index
    %2 = vector.load %arg1[%c32, %c0_3] : memref<176x96xf32, #tpu.memory_space<vmem>>, vector<32x32xf32>
    %c64 = arith.constant 64 : index
    %c0_4 = arith.constant 0 : index
    %3 = vector.load %arg1[%c64, %c0_4] : memref<176x96xf32, #tpu.memory_space<vmem>>, vector<32x64xf32>
    %c96 = arith.constant 96 : index
    %c0_5 = arith.constant 0 : index
    %4 = vector.load %arg1[%c96, %c0_5] : memref<176x96xf32, #tpu.memory_space<vmem>>, vector<64x32xf32>
    %c160 = arith.constant 160 : index
    %c0_6 = arith.constant 0 : index
    %5 = vector.load %arg1[%c160, %c0_6] : memref<176x96xf32, #tpu.memory_space<vmem>>, vector<1x96xf32>
    %c161 = arith.constant 161 : index
    %c0_7 = arith.constant 0 : index
    %6 = vector.load %arg1[%c161, %c0_7] : memref<176x96xf32, #tpu.memory_space<vmem>>, vector<1x32xf32>
    %c162 = arith.constant 162 : index
    %c0_8 = arith.constant 0 : index
    %7 = vector.load %arg1[%c162, %c0_8] : memref<176x96xf32, #tpu.memory_space<vmem>>, vector<1x64xf32>
    %c163 = arith.constant 163 : index
    %c0_9 = arith.constant 0 : index
    %8 = vector.load %arg1[%c163, %c0_9] : memref<176x96xf32, #tpu.memory_space<vmem>>, vector<1x32xf32>
    %c164 = arith.constant 164 : index
    %c0_10 = arith.constant 0 : index
    %9 = vector.load %arg1[%c164, %c0_10] : memref<176x96xf32, #tpu.memory_space<vmem>>, vector<1x32xf32>
    %c165 = arith.constant 165 : index
    %c0_11 = arith.constant 0 : index
    %10 = vector.load %arg1[%c165, %c0_11] : memref<176x96xf32, #tpu.memory_space<vmem>>, vector<1x32xf32>
    %c166 = arith.constant 166 : index
    %c0_12 = arith.constant 0 : index
    %11 = vector.load %arg1[%c166, %c0_12] : memref<176x96xf32, #tpu.memory_space<vmem>>, vector<1x32xf32>
    %c167 = arith.constant 167 : index
    %c0_13 = arith.constant 0 : index
    %12 = vector.load %arg1[%c167, %c0_13] : memref<176x96xf32, #tpu.memory_space<vmem>>, vector<1x32xf32>
    %cst = arith.constant dense<0.000000e+00> : vector<16x96xf32>
    %13 = tpu.matmul %0, %1, %cst {dimension_numbers = #tpu.dot_dimension_numbers<[1], [0], [0], [1], [0, 0, 1, 1], [], []>} : vector<16x32xf32>, vector<32x96xf32>, vector<16x96xf32> -> vector<16x96xf32>
    %14 = vector.broadcast %5 : vector<1x96xf32> to vector<16x96xf32>
    %15 = arith.addf %13, %14 : vector<16x96xf32>
    %cst_14 = arith.constant 0.000000e+00 : f32
    %16 = vector.broadcast %cst_14 : f32 to vector<8x32xf32>
    %17 = vector.extract_strided_slice %15 {offsets = [0, 0], sizes = [8, 8], strides = [1, 1]} : vector<16x96xf32> to vector<8x8xf32>
    %18 = vector.extract_strided_slice %15 {offsets = [0, 32], sizes = [8, 8], strides = [1, 1]} : vector<16x96xf32> to vector<8x8xf32>
    %19 = vector.extract_strided_slice %15 {offsets = [0, 64], sizes = [8, 8], strides = [1, 1]} : vector<16x96xf32> to vector<8x8xf32>
    %cst_15 = arith.constant dense<0.000000e+00> : vector<8x8xf32>
    %20 = tpu.matmul %17, %18, %cst_15 {dimension_numbers = #tpu.dot_dimension_numbers<[1], [1], [0], [0], [0, 0, 1, 0], [], []>} : vector<8x8xf32>, vector<8x8xf32>, vector<8x8xf32> -> vector<8x8xf32>
    %cst_16 = arith.constant dense<0xFF800000> : vector<8xf32>
    %21 = vector.multi_reduction <maximumf>, %20, %cst_16 [1] : vector<8x8xf32> to vector<8xf32>
    %22 = vector.shape_cast %21 : vector<8xf32> to vector<8x1xf32>
    %23 = vector.broadcast %22 : vector<8x1xf32> to vector<8x8xf32>
    %24 = arith.subf %20, %23 : vector<8x8xf32>
    %25 = math.exp %24 : vector<8x8xf32>
    %cst_17 = arith.constant dense<0.000000e+00> : vector<8xf32>
    %26 = vector.multi_reduction <add>, %25, %cst_17 [1] : vector<8x8xf32> to vector<8xf32>
    %27 = vector.shape_cast %26 : vector<8xf32> to vector<8x1xf32>
    %28 = tpu.reciprocal %27 {approx = true} : vector<8x1xf32> -> vector<8x1xf32>
    %29 = vector.broadcast %28 : vector<8x1xf32> to vector<8x8xf32>
    %30 = arith.mulf %25, %29 : vector<8x8xf32>
    %cst_18 = arith.constant dense<0.000000e+00> : vector<8x8xf32>
    %31 = tpu.matmul %30, %19, %cst_18 {dimension_numbers = #tpu.dot_dimension_numbers<[1], [0], [0], [1], [0, 0, 1, 1], [], []>} : vector<8x8xf32>, vector<8x8xf32>, vector<8x8xf32> -> vector<8x8xf32>
    %32 = vector.extract_strided_slice %2 {offsets = [0, 0], sizes = [8, 32], strides = [1, 1]} : vector<32x32xf32> to vector<8x32xf32>
    %cst_19 = arith.constant dense<0.000000e+00> : vector<8x32xf32>
    %33 = tpu.matmul %31, %32, %cst_19 {dimension_numbers = #tpu.dot_dimension_numbers<[1], [0], [0], [1], [0, 0, 1, 1], [], []>} : vector<8x8xf32>, vector<8x32xf32>, vector<8x32xf32> -> vector<8x32xf32>
    %34 = arith.addf %16, %33 : vector<8x32xf32>
    %35 = vector.extract_strided_slice %15 {offsets = [0, 8], sizes = [8, 8], strides = [1, 1]} : vector<16x96xf32> to vector<8x8xf32>
    %36 = vector.extract_strided_slice %15 {offsets = [0, 40], sizes = [8, 8], strides = [1, 1]} : vector<16x96xf32> to vector<8x8xf32>
    %37 = vector.extract_strided_slice %15 {offsets = [0, 72], sizes = [8, 8], strides = [1, 1]} : vector<16x96xf32> to vector<8x8xf32>
    %cst_20 = arith.constant dense<0.000000e+00> : vector<8x8xf32>
    %38 = tpu.matmul %35, %36, %cst_20 {dimension_numbers = #tpu.dot_dimension_numbers<[1], [1], [0], [0], [0, 0, 1, 0], [], []>} : vector<8x8xf32>, vector<8x8xf32>, vector<8x8xf32> -> vector<8x8xf32>
    %cst_21 = arith.constant dense<0xFF800000> : vector<8xf32>
    %39 = vector.multi_reduction <maximumf>, %38, %cst_21 [1] : vector<8x8xf32> to vector<8xf32>
    %40 = vector.shape_cast %39 : vector<8xf32> to vector<8x1xf32>
    %41 = vector.broadcast %40 : vector<8x1xf32> to vector<8x8xf32>
    %42 = arith.subf %38, %41 : vector<8x8xf32>
    %43 = math.exp %42 : vector<8x8xf32>
    %cst_22 = arith.constant dense<0.000000e+00> : vector<8xf32>
    %44 = vector.multi_reduction <add>, %43, %cst_22 [1] : vector<8x8xf32> to vector<8xf32>
    %45 = vector.shape_cast %44 : vector<8xf32> to vector<8x1xf32>
    %46 = tpu.reciprocal %45 {approx = true} : vector<8x1xf32> -> vector<8x1xf32>
    %47 = vector.broadcast %46 : vector<8x1xf32> to vector<8x8xf32>
    %48 = arith.mulf %43, %47 : vector<8x8xf32>
    %cst_23 = arith.constant dense<0.000000e+00> : vector<8x8xf32>
    %49 = tpu.matmul %48, %37, %cst_23 {dimension_numbers = #tpu.dot_dimension_numbers<[1], [0], [0], [1], [0, 0, 1, 1], [], []>} : vector<8x8xf32>, vector<8x8xf32>, vector<8x8xf32> -> vector<8x8xf32>
    %50 = vector.extract_strided_slice %2 {offsets = [8, 0], sizes = [8, 32], strides = [1, 1]} : vector<32x32xf32> to vector<8x32xf32>
    %cst_24 = arith.constant dense<0.000000e+00> : vector<8x32xf32>
    %51 = tpu.matmul %49, %50, %cst_24 {dimension_numbers = #tpu.dot_dimension_numbers<[1], [0], [0], [1], [0, 0, 1, 1], [], []>} : vector<8x8xf32>, vector<8x32xf32>, vector<8x32xf32> -> vector<8x32xf32>
    %52 = arith.addf %34, %51 : vector<8x32xf32>
    %53 = vector.extract_strided_slice %15 {offsets = [0, 16], sizes = [8, 8], strides = [1, 1]} : vector<16x96xf32> to vector<8x8xf32>
    %54 = vector.extract_strided_slice %15 {offsets = [0, 48], sizes = [8, 8], strides = [1, 1]} : vector<16x96xf32> to vector<8x8xf32>
    %55 = vector.extract_strided_slice %15 {offsets = [0, 80], sizes = [8, 8], strides = [1, 1]} : vector<16x96xf32> to vector<8x8xf32>
    %cst_25 = arith.constant dense<0.000000e+00> : vector<8x8xf32>
    %56 = tpu.matmul %53, %54, %cst_25 {dimension_numbers = #tpu.dot_dimension_numbers<[1], [1], [0], [0], [0, 0, 1, 0], [], []>} : vector<8x8xf32>, vector<8x8xf32>, vector<8x8xf32> -> vector<8x8xf32>
    %cst_26 = arith.constant dense<0xFF800000> : vector<8xf32>
    %57 = vector.multi_reduction <maximumf>, %56, %cst_26 [1] : vector<8x8xf32> to vector<8xf32>
    %58 = vector.shape_cast %57 : vector<8xf32> to vector<8x1xf32>
    %59 = vector.broadcast %58 : vector<8x1xf32> to vector<8x8xf32>
    %60 = arith.subf %56, %59 : vector<8x8xf32>
    %61 = math.exp %60 : vector<8x8xf32>
    %cst_27 = arith.constant dense<0.000000e+00> : vector<8xf32>
    %62 = vector.multi_reduction <add>, %61, %cst_27 [1] : vector<8x8xf32> to vector<8xf32>
    %63 = vector.shape_cast %62 : vector<8xf32> to vector<8x1xf32>
    %64 = tpu.reciprocal %63 {approx = true} : vector<8x1xf32> -> vector<8x1xf32>
    %65 = vector.broadcast %64 : vector<8x1xf32> to vector<8x8xf32>
    %66 = arith.mulf %61, %65 : vector<8x8xf32>
    %cst_28 = arith.constant dense<0.000000e+00> : vector<8x8xf32>
    %67 = tpu.matmul %66, %55, %cst_28 {dimension_numbers = #tpu.dot_dimension_numbers<[1], [0], [0], [1], [0, 0, 1, 1], [], []>} : vector<8x8xf32>, vector<8x8xf32>, vector<8x8xf32> -> vector<8x8xf32>
    %68 = vector.extract_strided_slice %2 {offsets = [16, 0], sizes = [8, 32], strides = [1, 1]} : vector<32x32xf32> to vector<8x32xf32>
    %cst_29 = arith.constant dense<0.000000e+00> : vector<8x32xf32>
    %69 = tpu.matmul %67, %68, %cst_29 {dimension_numbers = #tpu.dot_dimension_numbers<[1], [0], [0], [1], [0, 0, 1, 1], [], []>} : vector<8x8xf32>, vector<8x32xf32>, vector<8x32xf32> -> vector<8x32xf32>
    %70 = arith.addf %52, %69 : vector<8x32xf32>
    %71 = vector.extract_strided_slice %15 {offsets = [0, 24], sizes = [8, 8], strides = [1, 1]} : vector<16x96xf32> to vector<8x8xf32>
    %72 = vector.extract_strided_slice %15 {offsets = [0, 56], sizes = [8, 8], strides = [1, 1]} : vector<16x96xf32> to vector<8x8xf32>
    %73 = vector.extract_strided_slice %15 {offsets = [0, 88], sizes = [8, 8], strides = [1, 1]} : vector<16x96xf32> to vector<8x8xf32>
    %cst_30 = arith.constant dense<0.000000e+00> : vector<8x8xf32>
    %74 = tpu.matmul %71, %72, %cst_30 {dimension_numbers = #tpu.dot_dimension_numbers<[1], [1], [0], [0], [0, 0, 1, 0], [], []>} : vector<8x8xf32>, vector<8x8xf32>, vector<8x8xf32> -> vector<8x8xf32>
    %cst_31 = arith.constant dense<0xFF800000> : vector<8xf32>
    %75 = vector.multi_reduction <maximumf>, %74, %cst_31 [1] : vector<8x8xf32> to vector<8xf32>
    %76 = vector.shape_cast %75 : vector<8xf32> to vector<8x1xf32>
    %77 = vector.broadcast %76 : vector<8x1xf32> to vector<8x8xf32>
    %78 = arith.subf %74, %77 : vector<8x8xf32>
    %79 = math.exp %78 : vector<8x8xf32>
    %cst_32 = arith.constant dense<0.000000e+00> : vector<8xf32>
    %80 = vector.multi_reduction <add>, %79, %cst_32 [1] : vector<8x8xf32> to vector<8xf32>
    %81 = vector.shape_cast %80 : vector<8xf32> to vector<8x1xf32>
    %82 = tpu.reciprocal %81 {approx = true} : vector<8x1xf32> -> vector<8x1xf32>
    %83 = vector.broadcast %82 : vector<8x1xf32> to vector<8x8xf32>
    %84 = arith.mulf %79, %83 : vector<8x8xf32>
    %cst_33 = arith.constant dense<0.000000e+00> : vector<8x8xf32>
    %85 = tpu.matmul %84, %73, %cst_33 {dimension_numbers = #tpu.dot_dimension_numbers<[1], [0], [0], [1], [0, 0, 1, 1], [], []>} : vector<8x8xf32>, vector<8x8xf32>, vector<8x8xf32> -> vector<8x8xf32>
    %86 = vector.extract_strided_slice %2 {offsets = [24, 0], sizes = [8, 32], strides = [1, 1]} : vector<32x32xf32> to vector<8x32xf32>
    %cst_34 = arith.constant dense<0.000000e+00> : vector<8x32xf32>
    %87 = tpu.matmul %85, %86, %cst_34 {dimension_numbers = #tpu.dot_dimension_numbers<[1], [0], [0], [1], [0, 0, 1, 1], [], []>} : vector<8x8xf32>, vector<8x32xf32>, vector<8x32xf32> -> vector<8x32xf32>
    %88 = arith.addf %70, %87 : vector<8x32xf32>
    %cst_35 = arith.constant 0.000000e+00 : f32
    %89 = vector.broadcast %cst_35 : f32 to vector<8x32xf32>
    %90 = vector.extract_strided_slice %15 {offsets = [8, 0], sizes = [8, 8], strides = [1, 1]} : vector<16x96xf32> to vector<8x8xf32>
    %91 = vector.extract_strided_slice %15 {offsets = [8, 32], sizes = [8, 8], strides = [1, 1]} : vector<16x96xf32> to vector<8x8xf32>
    %92 = vector.extract_strided_slice %15 {offsets = [8, 64], sizes = [8, 8], strides = [1, 1]} : vector<16x96xf32> to vector<8x8xf32>
    %cst_36 = arith.constant dense<0.000000e+00> : vector<8x8xf32>
    %93 = tpu.matmul %90, %91, %cst_36 {dimension_numbers = #tpu.dot_dimension_numbers<[1], [1], [0], [0], [0, 0, 1, 0], [], []>} : vector<8x8xf32>, vector<8x8xf32>, vector<8x8xf32> -> vector<8x8xf32>
    %cst_37 = arith.constant dense<0xFF800000> : vector<8xf32>
    %94 = vector.multi_reduction <maximumf>, %93, %cst_37 [1] : vector<8x8xf32> to vector<8xf32>
    %95 = vector.shape_cast %94 : vector<8xf32> to vector<8x1xf32>
    %96 = vector.broadcast %95 : vector<8x1xf32> to vector<8x8xf32>
    %97 = arith.subf %93, %96 : vector<8x8xf32>
    %98 = math.exp %97 : vector<8x8xf32>
    %cst_38 = arith.constant dense<0.000000e+00> : vector<8xf32>
    %99 = vector.multi_reduction <add>, %98, %cst_38 [1] : vector<8x8xf32> to vector<8xf32>
    %100 = vector.shape_cast %99 : vector<8xf32> to vector<8x1xf32>
    %101 = tpu.reciprocal %100 {approx = true} : vector<8x1xf32> -> vector<8x1xf32>
    %102 = vector.broadcast %101 : vector<8x1xf32> to vector<8x8xf32>
    %103 = arith.mulf %98, %102 : vector<8x8xf32>
    %cst_39 = arith.constant dense<0.000000e+00> : vector<8x8xf32>
    %104 = tpu.matmul %103, %92, %cst_39 {dimension_numbers = #tpu.dot_dimension_numbers<[1], [0], [0], [1], [0, 0, 1, 1], [], []>} : vector<8x8xf32>, vector<8x8xf32>, vector<8x8xf32> -> vector<8x8xf32>
    %105 = vector.extract_strided_slice %2 {offsets = [0, 0], sizes = [8, 32], strides = [1, 1]} : vector<32x32xf32> to vector<8x32xf32>
    %cst_40 = arith.constant dense<0.000000e+00> : vector<8x32xf32>
    %106 = tpu.matmul %104, %105, %cst_40 {dimension_numbers = #tpu.dot_dimension_numbers<[1], [0], [0], [1], [0, 0, 1, 1], [], []>} : vector<8x8xf32>, vector<8x32xf32>, vector<8x32xf32> -> vector<8x32xf32>
    %107 = arith.addf %89, %106 : vector<8x32xf32>
    %108 = vector.extract_strided_slice %15 {offsets = [8, 8], sizes = [8, 8], strides = [1, 1]} : vector<16x96xf32> to vector<8x8xf32>
    %109 = vector.extract_strided_slice %15 {offsets = [8, 40], sizes = [8, 8], strides = [1, 1]} : vector<16x96xf32> to vector<8x8xf32>
    %110 = vector.extract_strided_slice %15 {offsets = [8, 72], sizes = [8, 8], strides = [1, 1]} : vector<16x96xf32> to vector<8x8xf32>
    %cst_41 = arith.constant dense<0.000000e+00> : vector<8x8xf32>
    %111 = tpu.matmul %108, %109, %cst_41 {dimension_numbers = #tpu.dot_dimension_numbers<[1], [1], [0], [0], [0, 0, 1, 0], [], []>} : vector<8x8xf32>, vector<8x8xf32>, vector<8x8xf32> -> vector<8x8xf32>
    %cst_42 = arith.constant dense<0xFF800000> : vector<8xf32>
    %112 = vector.multi_reduction <maximumf>, %111, %cst_42 [1] : vector<8x8xf32> to vector<8xf32>
    %113 = vector.shape_cast %112 : vector<8xf32> to vector<8x1xf32>
    %114 = vector.broadcast %113 : vector<8x1xf32> to vector<8x8xf32>
    %115 = arith.subf %111, %114 : vector<8x8xf32>
    %116 = math.exp %115 : vector<8x8xf32>
    %cst_43 = arith.constant dense<0.000000e+00> : vector<8xf32>
    %117 = vector.multi_reduction <add>, %116, %cst_43 [1] : vector<8x8xf32> to vector<8xf32>
    %118 = vector.shape_cast %117 : vector<8xf32> to vector<8x1xf32>
    %119 = tpu.reciprocal %118 {approx = true} : vector<8x1xf32> -> vector<8x1xf32>
    %120 = vector.broadcast %119 : vector<8x1xf32> to vector<8x8xf32>
    %121 = arith.mulf %116, %120 : vector<8x8xf32>
    %cst_44 = arith.constant dense<0.000000e+00> : vector<8x8xf32>
    %122 = tpu.matmul %121, %110, %cst_44 {dimension_numbers = #tpu.dot_dimension_numbers<[1], [0], [0], [1], [0, 0, 1, 1], [], []>} : vector<8x8xf32>, vector<8x8xf32>, vector<8x8xf32> -> vector<8x8xf32>
    %123 = vector.extract_strided_slice %2 {offsets = [8, 0], sizes = [8, 32], strides = [1, 1]} : vector<32x32xf32> to vector<8x32xf32>
    %cst_45 = arith.constant dense<0.000000e+00> : vector<8x32xf32>
    %124 = tpu.matmul %122, %123, %cst_45 {dimension_numbers = #tpu.dot_dimension_numbers<[1], [0], [0], [1], [0, 0, 1, 1], [], []>} : vector<8x8xf32>, vector<8x32xf32>, vector<8x32xf32> -> vector<8x32xf32>
    %125 = arith.addf %107, %124 : vector<8x32xf32>
    %126 = vector.extract_strided_slice %15 {offsets = [8, 16], sizes = [8, 8], strides = [1, 1]} : vector<16x96xf32> to vector<8x8xf32>
    %127 = vector.extract_strided_slice %15 {offsets = [8, 48], sizes = [8, 8], strides = [1, 1]} : vector<16x96xf32> to vector<8x8xf32>
    %128 = vector.extract_strided_slice %15 {offsets = [8, 80], sizes = [8, 8], strides = [1, 1]} : vector<16x96xf32> to vector<8x8xf32>
    %cst_46 = arith.constant dense<0.000000e+00> : vector<8x8xf32>
    %129 = tpu.matmul %126, %127, %cst_46 {dimension_numbers = #tpu.dot_dimension_numbers<[1], [1], [0], [0], [0, 0, 1, 0], [], []>} : vector<8x8xf32>, vector<8x8xf32>, vector<8x8xf32> -> vector<8x8xf32>
    %cst_47 = arith.constant dense<0xFF800000> : vector<8xf32>
    %130 = vector.multi_reduction <maximumf>, %129, %cst_47 [1] : vector<8x8xf32> to vector<8xf32>
    %131 = vector.shape_cast %130 : vector<8xf32> to vector<8x1xf32>
    %132 = vector.broadcast %131 : vector<8x1xf32> to vector<8x8xf32>
    %133 = arith.subf %129, %132 : vector<8x8xf32>
    %134 = math.exp %133 : vector<8x8xf32>
    %cst_48 = arith.constant dense<0.000000e+00> : vector<8xf32>
    %135 = vector.multi_reduction <add>, %134, %cst_48 [1] : vector<8x8xf32> to vector<8xf32>
    %136 = vector.shape_cast %135 : vector<8xf32> to vector<8x1xf32>
    %137 = tpu.reciprocal %136 {approx = true} : vector<8x1xf32> -> vector<8x1xf32>
    %138 = vector.broadcast %137 : vector<8x1xf32> to vector<8x8xf32>
    %139 = arith.mulf %134, %138 : vector<8x8xf32>
    %cst_49 = arith.constant dense<0.000000e+00> : vector<8x8xf32>
    %140 = tpu.matmul %139, %128, %cst_49 {dimension_numbers = #tpu.dot_dimension_numbers<[1], [0], [0], [1], [0, 0, 1, 1], [], []>} : vector<8x8xf32>, vector<8x8xf32>, vector<8x8xf32> -> vector<8x8xf32>
    %141 = vector.extract_strided_slice %2 {offsets = [16, 0], sizes = [8, 32], strides = [1, 1]} : vector<32x32xf32> to vector<8x32xf32>
    %cst_50 = arith.constant dense<0.000000e+00> : vector<8x32xf32>
    %142 = tpu.matmul %140, %141, %cst_50 {dimension_numbers = #tpu.dot_dimension_numbers<[1], [0], [0], [1], [0, 0, 1, 1], [], []>} : vector<8x8xf32>, vector<8x32xf32>, vector<8x32xf32> -> vector<8x32xf32>
    %143 = arith.addf %125, %142 : vector<8x32xf32>
    %144 = vector.extract_strided_slice %15 {offsets = [8, 24], sizes = [8, 8], strides = [1, 1]} : vector<16x96xf32> to vector<8x8xf32>
    %145 = vector.extract_strided_slice %15 {offsets = [8, 56], sizes = [8, 8], strides = [1, 1]} : vector<16x96xf32> to vector<8x8xf32>
    %146 = vector.extract_strided_slice %15 {offsets = [8, 88], sizes = [8, 8], strides = [1, 1]} : vector<16x96xf32> to vector<8x8xf32>
    %cst_51 = arith.constant dense<0.000000e+00> : vector<8x8xf32>
    %147 = tpu.matmul %144, %145, %cst_51 {dimension_numbers = #tpu.dot_dimension_numbers<[1], [1], [0], [0], [0, 0, 1, 0], [], []>} : vector<8x8xf32>, vector<8x8xf32>, vector<8x8xf32> -> vector<8x8xf32>
    %cst_52 = arith.constant dense<0xFF800000> : vector<8xf32>
    %148 = vector.multi_reduction <maximumf>, %147, %cst_52 [1] : vector<8x8xf32> to vector<8xf32>
    %149 = vector.shape_cast %148 : vector<8xf32> to vector<8x1xf32>
    %150 = vector.broadcast %149 : vector<8x1xf32> to vector<8x8xf32>
    %151 = arith.subf %147, %150 : vector<8x8xf32>
    %152 = math.exp %151 : vector<8x8xf32>
    %cst_53 = arith.constant dense<0.000000e+00> : vector<8xf32>
    %153 = vector.multi_reduction <add>, %152, %cst_53 [1] : vector<8x8xf32> to vector<8xf32>
    %154 = vector.shape_cast %153 : vector<8xf32> to vector<8x1xf32>
    %155 = tpu.reciprocal %154 {approx = true} : vector<8x1xf32> -> vector<8x1xf32>
    %156 = vector.broadcast %155 : vector<8x1xf32> to vector<8x8xf32>
    %157 = arith.mulf %152, %156 : vector<8x8xf32>
    %cst_54 = arith.constant dense<0.000000e+00> : vector<8x8xf32>
    %158 = tpu.matmul %157, %146, %cst_54 {dimension_numbers = #tpu.dot_dimension_numbers<[1], [0], [0], [1], [0, 0, 1, 1], [], []>} : vector<8x8xf32>, vector<8x8xf32>, vector<8x8xf32> -> vector<8x8xf32>
    %159 = vector.extract_strided_slice %2 {offsets = [24, 0], sizes = [8, 32], strides = [1, 1]} : vector<32x32xf32> to vector<8x32xf32>
    %cst_55 = arith.constant dense<0.000000e+00> : vector<8x32xf32>
    %160 = tpu.matmul %158, %159, %cst_55 {dimension_numbers = #tpu.dot_dimension_numbers<[1], [0], [0], [1], [0, 0, 1, 1], [], []>} : vector<8x8xf32>, vector<8x32xf32>, vector<8x32xf32> -> vector<8x32xf32>
    %161 = arith.addf %143, %160 : vector<8x32xf32>
    %162 = tpu.concatenate %88, %161 in 0 : vector<8x32xf32>, vector<8x32xf32> -> vector<16x32xf32>
    %163 = vector.broadcast %6 : vector<1x32xf32> to vector<16x32xf32>
    %164 = arith.addf %162, %163 : vector<16x32xf32>
    %165 = arith.addf %0, %164 : vector<16x32xf32>
    %cst_56 = arith.constant dense<0.000000e+00> : vector<16xf32>
    %166 = vector.multi_reduction <add>, %165, %cst_56 [1] : vector<16x32xf32> to vector<16xf32>
    %167 = vector.shape_cast %166 : vector<16xf32> to vector<16x1xf32>
    %cst_57 = arith.constant 3.200000e+01 : f32
    %168 = vector.broadcast %cst_57 : f32 to vector<16x1xf32>
    %169 = arith.divf %167, %168 : vector<16x1xf32>
    %170 = vector.broadcast %169 : vector<16x1xf32> to vector<16x32xf32>
    %171 = arith.subf %165, %170 : vector<16x32xf32>
    %172 = arith.mulf %171, %171 : vector<16x32xf32>
    %cst_58 = arith.constant dense<0.000000e+00> : vector<16xf32>
    %173 = vector.multi_reduction <add>, %172, %cst_58 [1] : vector<16x32xf32> to vector<16xf32>
    %174 = vector.shape_cast %173 : vector<16xf32> to vector<16x1xf32>
    %cst_59 = arith.constant 3.200000e+01 : f32
    %175 = vector.broadcast %cst_59 : f32 to vector<16x1xf32>
    %176 = arith.divf %174, %175 : vector<16x1xf32>
    %177 = vector.broadcast %169 : vector<16x1xf32> to vector<16x32xf32>
    %178 = arith.subf %165, %177 : vector<16x32xf32>
    %cst_60 = arith.constant 9.99999974E-6 : f32
    %179 = vector.broadcast %cst_60 : f32 to vector<16x1xf32>
    %180 = arith.addf %176, %179 : vector<16x1xf32>
    %181 = math.rsqrt %180 : vector<16x1xf32>
    %182 = vector.broadcast %181 : vector<16x1xf32> to vector<16x32xf32>
    %183 = arith.mulf %178, %182 : vector<16x32xf32>
    %184 = vector.broadcast %9 : vector<1x32xf32> to vector<16x32xf32>
    %185 = arith.mulf %183, %184 : vector<16x32xf32>
    %186 = vector.broadcast %10 : vector<1x32xf32> to vector<16x32xf32>
    %187 = arith.addf %185, %186 : vector<16x32xf32>
    %cst_61 = arith.constant dense<0.000000e+00> : vector<16x64xf32>
    %188 = tpu.matmul %187, %3, %cst_61 {dimension_numbers = #tpu.dot_dimension_numbers<[1], [0], [0], [1], [0, 0, 1, 1], [], []>} : vector<16x32xf32>, vector<32x64xf32>, vector<16x64xf32> -> vector<16x64xf32>
    %189 = vector.broadcast %7 : vector<1x64xf32> to vector<16x64xf32>
    %190 = arith.addf %188, %189 : vector<16x64xf32>
    %cst_62 = arith.constant 0.000000e+00 : f32
    %191 = vector.broadcast %cst_62 : f32 to vector<16x64xf32>
    %192 = arith.maximumf %190, %191 : vector<16x64xf32>
    %cst_63 = arith.constant dense<0.000000e+00> : vector<16x32xf32>
    %193 = tpu.matmul %192, %4, %cst_63 {dimension_numbers = #tpu.dot_dimension_numbers<[1], [0], [0], [1], [0, 0, 1, 1], [], []>} : vector<16x64xf32>, vector<64x32xf32>, vector<16x32xf32> -> vector<16x32xf32>
    %194 = vector.broadcast %8 : vector<1x32xf32> to vector<16x32xf32>
    %195 = arith.addf %193, %194 : vector<16x32xf32>
    %196 = arith.addf %187, %195 : vector<16x32xf32>
    %cst_64 = arith.constant dense<0.000000e+00> : vector<16xf32>
    %197 = vector.multi_reduction <add>, %196, %cst_64 [1] : vector<16x32xf32> to vector<16xf32>
    %198 = vector.shape_cast %197 : vector<16xf32> to vector<16x1xf32>
    %cst_65 = arith.constant 3.200000e+01 : f32
    %199 = vector.broadcast %cst_65 : f32 to vector<16x1xf32>
    %200 = arith.divf %198, %199 : vector<16x1xf32>
    %201 = vector.broadcast %200 : vector<16x1xf32> to vector<16x32xf32>
    %202 = arith.subf %196, %201 : vector<16x32xf32>
    %203 = arith.mulf %202, %202 : vector<16x32xf32>
    %cst_66 = arith.constant dense<0.000000e+00> : vector<16xf32>
    %204 = vector.multi_reduction <add>, %203, %cst_66 [1] : vector<16x32xf32> to vector<16xf32>
    %205 = vector.shape_cast %204 : vector<16xf32> to vector<16x1xf32>
    %cst_67 = arith.constant 3.200000e+01 : f32
    %206 = vector.broadcast %cst_67 : f32 to vector<16x1xf32>
    %207 = arith.divf %205, %206 : vector<16x1xf32>
    %208 = vector.broadcast %200 : vector<16x1xf32> to vector<16x32xf32>
    %209 = arith.subf %196, %208 : vector<16x32xf32>
    %cst_68 = arith.constant 9.99999974E-6 : f32
    %210 = vector.broadcast %cst_68 : f32 to vector<16x1xf32>
    %211 = arith.addf %207, %210 : vector<16x1xf32>
    %212 = math.rsqrt %211 : vector<16x1xf32>
    %213 = vector.broadcast %212 : vector<16x1xf32> to vector<16x32xf32>
    %214 = arith.mulf %209, %213 : vector<16x32xf32>
    %215 = vector.broadcast %11 : vector<1x32xf32> to vector<16x32xf32>
    %216 = arith.mulf %214, %215 : vector<16x32xf32>
    %217 = vector.broadcast %12 : vector<1x32xf32> to vector<16x32xf32>
    %218 = arith.addf %216, %217 : vector<16x32xf32>
    %c0_69 = arith.constant 0 : index
    %c0_70 = arith.constant 0 : index
    %219 = vector.load %arg2[%c0_69, %c0_70] : memref<16x32xf32, #tpu.memory_space<vmem>>, vector<16x32xf32>
    tpu.vector_store %arg2[%c0_69, %c0_70], %218 {strides = array<i32>} : memref<16x32xf32, #tpu.memory_space<vmem>>, vector<16x32xf32>,
    return
  }
}

</mosaic_0001>

<bundles_post_ra>
// kernel: tpu_custom_call.1
= control target key start
LH: loop header
LB: loop body
LE: loop exit
PB: predicated region body
PF: predicated region fallthrough
CT: control target
= control target key end

     0   :  { %7 = vsyncpa [#allocation3], 0  ;;  %s1406_s0 = inlined_call_operand.hbm [shape: f32[16,32], index: 0, kind: input, shape index: {}]   ;;  %s1407_s1 = inlined_call_operand.hbm [shape: f32[176,96], index: 1, kind: input, shape index: {}]   ;;  %s1408_s2 = inlined_call_operand.hbm [shape: f32[16,32], index: 2, kind: output, shape index: {}]  }
   0x1   :  { %8 = vsyncpa [#allocation6], 0 }
   0x2   :  { %9 = vsyncpa [#allocation4], 0  ;;  %s14_s11 = sshll.u32 %s1406_s0, 4  ;;  %s1198_s12 = smov [#allocation2]   ;;  %s15_s11 = int_to_ptr.hbm [resolvable:$true] %s14_s11 }
   0x3   :  { %s16_s13 = sshll.u32 %s1198_s12, 4  ;;  %s27_s16 = sshll.u32 %s1407_s1, 4  ;;  %s17_s13 = int_to_ptr.vmem [resolvable:$true] %s16_s13  ;;  %s28_s16 = int_to_ptr.hbm [resolvable:$true] %s27_s16 }
   0x4   :  { %s1199_s17 = smov 128   ;;  %s1200_s18 = smov 8  }
   0x5   :  { %22 = dma.hbm_to_vmem [thread:$0]  %s15_s11, 256, %s17_s13, [#allocation3], %s1199_s17, %s1199_s17, %s1200_s18  }
   0x6   :  { %s1201_s19 = smov [#allocation5]  }
   0x7   :  { %s29_s20 = sshll.u32 %s1201_s19, 4  ;;  %s30_s20 = int_to_ptr.vmem [resolvable:$true] %s29_s20 }
   0x8   :  { %35 = dma.hbm_to_vmem [thread:$0]  %s28_s16, 2816, %s30_s20, [#allocation6], %s1199_s17, %s1199_s17, %s1200_s18  }
   0x9   :  { %1192 = dma.done.wait [#allocation3], 256  }
   0xa   :  { %1193 = vsyncadd [#allocation3], 4294967040 }
   0xb   :  { %1194 = dma.done.wait [#allocation6], 2816  }
   0xc   :  { %1195 = vsyncadd [#allocation6], 4294964480  ;;  %v49_v0 = vld [vmem:[#allocation5 + $0x18] sm:$0xff]  ;;  %v48_v1 = vld [vmem:[#allocation5 + $0x10] sm:$0xff]  ;;  %vm75_vm0 = vcmask 261120   ;;  %s1202_s0 = smov 120  }
   0xd   :  { %94 = vmatpush.msra.mxu0 %v49_v0  ;;  %1049 = vmatpush.msra.mxu2 %v49_v0  ;;  %v47_v2 = vld [vmem:[#allocation5 + $0x8] sm:$0xff]  ;;  %v46_v3 = vld [vmem:[#allocation5] sm:$0xff]  ;;  %v1242_v4 = vld [vmem:[#allocation2] sm:$0xff]  ;;  %s1203_s1 = smov 96   ;;  %s1204_s21 = smov 88   ;;  %vm108_vm1 = vcmask 64512  }
   0xe   :  { %v1070_v5 = vld [vmem:[#allocation5 + $0xa0] ss:$0 sm:$0xff]  ;;  %v1253_v8 = vld [vmem:[#allocation2 + $0x8] sm:$0xff]  ;;  %s1205_s22 = smov 112   ;;  %s1206_s23 = smov 72   ;;  %v51_v39 = vld [vmem:[#allocation5 + $0x28] sm:$0xff] }
   0xf   :  { %95 = vmatpush.msra.mxu0 %v48_v1  ;;  %1050 = vmatpush.msra.mxu2 %v48_v1  ;;  %s1207_s24 = smov 64   ;;  %s1208_s25 = smov 56   ;;  %v50_v38 = vld [vmem:[#allocation5 + $0x20] sm:$0xff]  ;;  %v52_v42 = vld [vmem:[#allocation5 + $0x30] sm:$0xff]  ;;  %vm907_vm6 = vcmask 523264  }
  0x10   :  { %s1209_s26 = smov 80   ;;  %s1210_s27 = smov 48  }
  0x11   :  { %96 = vmatpush.msra.mxu0 %v47_v2  ;;  %1051 = vmatpush.msra.mxu2 %v47_v2  ;;  %s1211_s28 = smov 104   ;;  %s1212_s29 = smov 40  }
  0x12   :  { %s1214_s30 = smov [#allocation7]   ;;  %s997_s6 = sshll.u32 %s1408_s2, 4  ;;  %s998_s6 = int_to_ptr.hbm [resolvable:$true] %s997_s6 }
  0x13   :  { %97 = vmatpush.msra.mxu0 %v46_v3  ;;  %1052 = vmatpush.msra.mxu2 %v46_v3  ;;  %s995_s3 = sshll.u32 %s1214_s30, 4  ;;  %s996_s3 = int_to_ptr.vmem [resolvable:$true] %s995_s3 }
  0x14   :  { %1011 = vmatmul.msk.f32.vlgmr.msra.gmra.mxu0 %vm75_vm0, %v1242_v4  ;;  %1012 = vmatmul.msk.f32.vlgmr.msra.gmra.mxu2 %vm75_vm0, %v1253_v8 }
  0x91   :  { %v99_v6 = vpop.f32.mrf.mxu0 }
  0x92   :  { %v1246_v7 = vadd.f32 %v1070_v5, %v99_v6 }
  0x94   :  { %170 = vrot.lane.b32.xlu1 %v1246_v7, %s1202_s0  ;;  %106 = vrot.lane.b32.xlu0 %v1246_v7, %s1203_s1 }
  0x97   :  { %v102_v16 = vpop.f32.mrf.mxu2 }
  0x98   :  { %v1266_v17 = vadd.f32 %v1070_v5, %v102_v16 }
  0x9c   :  { %172 = vrot.lane.b32.xlu0 %v1246_v7, %s1204_s21 }
 0x106   :  { %v107_v9 = vpop.permute.xlu0 %106  ;;  %v171_v11 = vpop.permute.xlu1 %170 }
 0x107   :  { %1013 = vmatpush.xpose.msk.msra.mxu1 %vm108_vm1, %v107_v9 }
 0x10a   :  { %1014 = vmatmul.msk.f32.vlgmr.msra.gmra.mxu1 %vm108_vm1, %v1246_v7 }
 0x10b   :  { %253 = vmatpush.msrb.mxu1 %v51_v39 }
 0x10e   :  { %v173_v10 = vpop.permute.xlu0 %172 }
 0x10f   :  { %1016 = vmatpush.xpose.msk.msra.mxu3 %vm108_vm1, %v173_v10 }
 0x112   :  { %1017 = vmatmul.msk.f32.vlgmr.msra.gmra.mxu3 %vm108_vm1, %v171_v11 }
 0x113   :  { %276 = vmatpush.msrb.mxu3 %v50_v38 }
 0x115   :  { %364 = vmatpush.msra.mxu3 %v52_v42 }
 0x187   :  { %v130_v12 = vpop.f32.mrf.mxu1 }
 0x188   :  { %v133_v13 = vsel %vm108_vm1, %v130_v12, -inf }
 0x189   :  { %134 = vmax.xlane.f32.xlu1 %v133_v13 }
 0x195   :  { %v195_v14 = vpop.f32.mrf.mxu3 }
 0x196   :  { %v198_v15 = vsel %vm108_vm1, %v195_v14, -inf }
 0x197   :  { %199 = vmax.xlane.f32.xlu2 %v198_v15 }
 0x1a2   :  { %281 = vrot.lane.b32.xlu1 %v1246_v7, %s1205_s22 }
 0x1aa   :  { %460 = vrot.lane.b32.xlu1 %v1266_v17, %s1203_s1 }
 0x1b2   :  { %372 = vrot.lane.b32.xlu1 %v1246_v7, %s1206_s23 }
 0x1fc   :  { %v135_v18 = vpop.xlane.xlu1 %134 }
 0x1fd   :  { %v136_v19 = vsub.f32 %v130_v12, %v135_v18 }
 0x1ff   :  { %v137_v20 = vmul.f32 1.442695, %v136_v19 }
 0x201   :  { %1078 = vpow2.f32 %v137_v20 }
 0x207   :  { %v1079_v21 = vpop.eup %1078 }
 0x208   :  { %v139_v22 = vsel %vm108_vm1, %v1079_v21, 0.0 }
 0x209   :  { %140 = vadd.xlane.f32.xlu2 %v139_v22 }
 0x20a   :  { %v200_v23 = vpop.xlane.xlu2 %199 }
 0x20b   :  { %v201_v24 = vsub.f32 %v195_v14, %v200_v23 }
 0x20d   :  { %v202_v25 = vmul.f32 1.442695, %v201_v24 }
 0x20f   :  { %1080 = vpow2.f32 %v202_v25 }
 0x214   :  { %v282_v37 = vpop.permute.xlu1 %281 }
 0x215   :  { %v1081_v26 = vpop.eup %1080 }
 0x216   :  { %v204_v27 = vsel %vm108_vm1, %v1081_v26, 0.0 }
 0x217   :  { %205 = vadd.xlane.f32.xlu0 %v204_v27  ;;  %v53_v27 = vld [vmem:[#allocation5 + $0x38] sm:$0xff] }
 0x21c   :  { %v461_v43 = vpop.permute.xlu1 %460 }
 0x221   :  { %144 = vrot.lane.b32.xlu2 %v1246_v7, %s1207_s24 }
 0x224   :  { %v373_v56 = vpop.permute.xlu1 %372 }
 0x229   :  { %209 = vrot.lane.b32.xlu2 %v1246_v7, %s1208_s25 }
 0x231   :  { %283 = vrot.lane.b32.xlu2 %v1246_v7, %s1209_s26 }
 0x27c   :  { %v141_v28 = vpop.xlane.xlu2 %140 }
 0x27d   :  { %1082 = vrcp.f32 %v141_v28 }
 0x283   :  { %v1083_v29 = vpop.eup %1082 }
 0x284   :  { %v145_v30 = vpop.permute.xlu2 %144  ;;  %v143_v31 = vmul.f32 %v1083_v29, %v1079_v21 }
 0x285   :  { %165 = vmatpush.msrb.mxu2 %v145_v30 }
 0x286   :  { %1015 = vmatmul.msk.f32.vlgmr.msrb.gmra.mxu2 %vm108_vm1, %v143_v31 }
 0x28a   :  { %v206_v32 = vpop.xlane.xlu0 %205 }
 0x28b   :  { %1084 = vrcp.f32 %v206_v32 }
 0x28c   :  { %v210_v33 = vpop.permute.xlu2 %209 }
 0x28d   :  { %230 = vmatpush.msra.mxu2 %v210_v33 }
 0x291   :  { %v1085_v34 = vpop.eup %1084 }
 0x292   :  { %v208_v35 = vmul.f32 %v1085_v34, %v1081_v26 }
 0x294   :  { %1018 = vmatmul.msk.f32.vlgmr.msra.gmra.mxu2 %vm108_vm1, %v208_v35  ;;  %v284_v36 = vpop.permute.xlu2 %283 }
 0x295   :  { %1021 = vmatpush.xpose.msk.msrb.mxu2 %vm108_vm1, %v284_v36 }
 0x29c   :  { %1022 = vmatmul.msk.f32.vlgmr.msrb.gmra.mxu2 %vm108_vm1, %v282_v37 }
 0x309   :  { %v167_v40 = vpop.f32.mrf.mxu2 }
 0x30a   :  { %1020 = vmatmul.msk.f32.vlgmr.msrb.gmra.mxu3 %vm108_vm1, %v167_v40 }
 0x30b   :  { %1029 = vmatpush.xpose.msk.msrb.mxu3 %vm108_vm1, %v461_v43 }
 0x317   :  { %v232_v41 = vpop.f32.mrf.mxu2 }
 0x318   :  { %1019 = vmatmul.msk.f32.vlgmr.msrb.gmra.mxu1 %vm108_vm1, %v232_v41 }
 0x31f   :  { %v306_v44 = vpop.f32.mrf.mxu2 }
 0x320   :  { %v309_v45 = vsel %vm108_vm1, %v306_v44, -inf }
 0x321   :  { %310 = vmax.xlane.f32.xlu2 %v309_v45 }
 0x339   :  { %497 = vrot.lane.b32.xlu2 %v1266_v17, %s1207_s24 }
 0x38d   :  { %v1305_v62 = vpop.f32.mrf.mxu3 }
 0x394   :  { %v311_v46 = vpop.xlane.xlu2 %310 }
 0x395   :  { %v312_v47 = vsub.f32 %v306_v44, %v311_v46  ;;  %v1297_v58 = vpop.f32.mrf.mxu1 }
 0x397   :  { %v313_v48 = vmul.f32 1.442695, %v312_v47 }
 0x399   :  { %1086 = vpow2.f32 %v313_v48  ;;  %v279_v48 = vadd.f32 %v1305_v62, %v1297_v58 }
 0x39c   :  { %v498_v49 = vpop.permute.xlu2 %497 }
 0x39d   :  { %518 = vmatpush.msrb.mxu0 %v498_v49 }
 0x39f   :  { %629 = vmatpush.msra.mxu0 %v50_v38  ;;  %v1087_v50 = vpop.eup %1086 }
 0x3a0   :  { %v315_v51 = vsel %vm108_vm1, %v1087_v50, 0.0 }
 0x3a1   :  { %316 = vadd.xlane.f32.xlu0 %v315_v51 }
 0x3b5   :  { %320 = vrot.lane.b32.xlu0 %v1246_v7, %s1210_s27 }
 0x3bd   :  { %370 = vrot.lane.b32.xlu0 %v1246_v7, %s1211_s28 }
 0x414   :  { %v317_v52 = vpop.xlane.xlu0 %316 }
 0x415   :  { %1088 = vrcp.f32 %v317_v52  ;;  %v1348_v52 = vld [vmem:[#allocation5 + $0xa1] ss:$0 sm:$0xff] }
 0x41b   :  { %v1089_v53 = vpop.eup %1088 }
 0x41c   :  { %v319_v54 = vmul.f32 %v1089_v53, %v1087_v50 }
 0x427   :  { %v321_v55 = vpop.permute.xlu0 %320 }
 0x428   :  { %341 = vmatpush.msra.mxu1 %v321_v55 }
 0x429   :  { %1023 = vmatmul.msk.f32.vlgmr.msra.gmra.mxu1 %vm108_vm1, %v319_v54 }
 0x42a   :  { %1025 = vmatpush.xpose.msk.msrb.mxu1 %vm108_vm1, %v373_v56 }
 0x42e   :  { %453 = vmatpush.msra.mxu1 %v53_v27 }
 0x42f   :  { %v371_v57 = vpop.permute.xlu0 %370 }
 0x431   :  { %1026 = vmatmul.msk.f32.vlgmr.msrb.gmra.mxu1 %vm108_vm1, %v371_v57 }
 0x4a6   :  { %v343_v59 = vpop.f32.mrf.mxu1 }
 0x4a7   :  { %1024 = vmatmul.msk.f32.vlgmr.msra.gmra.mxu3 %vm108_vm1, %v343_v59 }
 0x4a8   :  { %606 = vmatpush.msra.mxu3 %v51_v39 }
 0x4ae   :  { %v395_v60 = vpop.f32.mrf.mxu1 }
 0x4af   :  { %1030 = vmatmul.msk.f32.vlgmr.msrb.gmra.mxu3 %vm108_vm1, %v1266_v17  ;;  %v398_v61 = vsel %vm108_vm1, %v395_v60, -inf }
 0x4b0   :  { %399 = vmax.xlane.f32.xlu2 %v398_v61  ;;  %717 = vmatpush.msrb.mxu3 %v52_v42 }
 0x4c8   :  { %636 = vrot.lane.b32.xlu2 %v1266_v17, %s1209_s26 }
 0x523   :  { %v400_v63 = vpop.xlane.xlu2 %399 }
 0x524   :  { %v401_v0 = vsub.f32 %v395_v60, %v400_v63 }
 0x526   :  { %v402_v2 = vmul.f32 1.442695, %v401_v0 }
 0x528   :  { %1090 = vpow2.f32 %v402_v2 }
 0x52a   :  { %v1307_v1 = vpop.f32.mrf.mxu3 }
 0x52b   :  { %v637_v24 = vpop.permute.xlu2 %636  ;;  %v369_v50 = vadd.f32 %v1307_v1, %v279_v48  ;;  %v62_v48 = vld [vmem:[#allocation5 + $0x80] sm:$0xff] }
 0x52e   :  { %v1091_v6 = vpop.eup %1090 }
 0x52f   :  { %v404_v9 = vsel %vm108_vm1, %v1091_v6, 0.0 }
 0x532   :  { %v483_v3 = vpop.f32.mrf.mxu3 }
 0x533   :  { %v486_v5 = vsel %vm108_vm1, %v483_v3, -inf }
 0x534   :  { %487 = vmax.xlane.f32.xlu1 %v486_v5  ;;  %v1213_v5 = vmov 32.0  }
 0x53c   :  { %405 = vadd.xlane.f32.xlu1 %v404_v9 }
 0x555   :  { %525 = vrot.lane.b32.xlu1 %v1266_v17, %s1204_s21 }
 0x55d   :  { %725 = vrot.lane.b32.xlu1 %v1266_v17, %s1206_s23 }
 0x5a7   :  { %v488_v10 = vpop.xlane.xlu1 %487 }
 0x5a8   :  { %v489_v11 = vsub.f32 %v483_v3, %v488_v10 }
 0x5aa   :  { %v490_v12 = vmul.f32 1.442695, %v489_v11 }
 0x5ac   :  { %1092 = vpow2.f32 %v490_v12 }
 0x5af   :  { %v406_v15 = vpop.xlane.xlu1 %405 }
 0x5b2   :  { %v1093_v13 = vpop.eup %1092 }
 0x5b3   :  { %v492_v14 = vsel %vm108_vm1, %v1093_v13, 0.0 }
 0x5b4   :  { %493 = vadd.xlane.f32.xlu0 %v492_v14 }
 0x5c7   :  { %v526_v16 = vpop.permute.xlu1 %525 }
 0x5c8   :  { %409 = vrot.lane.b32.xlu0 %v1246_v7, %s1212_s29 }
 0x5cf   :  { %v726_v21 = vpop.permute.xlu1 %725 }
 0x5d0   :  { %523 = vrot.lane.b32.xlu0 %v1266_v17, %s1202_s0 }
 0x5d8   :  { %634 = vrot.lane.b32.xlu0 %v1266_v17, %s1205_s22 }
 0x5e0   :  { %723 = vrot.lane.b32.xlu0 %v1266_v17, %s1211_s28 }
 0x627   :  { %v494_v18 = vpop.xlane.xlu0 %493 }
 0x628   :  { %1094 = vrcp.f32 %v494_v18 }
 0x629   :  { %1096 = vrcp.f32 %v406_v15 }
 0x62e   :  { %v1095_v19 = vpop.eup %1094 }
 0x62f   :  { %v496_v20 = vmul.f32 %v1095_v19, %v1093_v13  ;;  %v1097_v7 = vpop.eup %1096 }
 0x630   :  { %v408_v22 = vmul.f32 %v1097_v7, %v1091_v6 }
 0x631   :  { %1031 = vmatmul.msk.f32.vlgmr.msrb.gmra.mxu0 %vm108_vm1, %v496_v20 }
 0x632   :  { %1041 = vmatpush.xpose.msk.msrb.mxu0 %vm108_vm1, %v726_v21 }
 0x63a   :  { %v410_v23 = vpop.permute.xlu0 %409 }
 0x63b   :  { %430 = vmatpush.msra.mxu2 %v410_v23 }
 0x63c   :  { %1027 = vmatmul.msk.f32.vlgmr.msra.gmra.mxu2 %vm108_vm1, %v408_v22 }
 0x63d   :  { %1032 = vmatpush.xpose.msk.msrb.mxu2 %vm108_vm1, %v526_v16 }
 0x641   :  { %1037 = vmatpush.xpose.msk.msra.mxu2 %vm108_vm1, %v637_v24  ;;  %v57_v24 = vld [vmem:[#allocation5 + $0x58] sm:$0xff] }
 0x642   :  { %v524_v25 = vpop.permute.xlu0 %523 }
 0x644   :  { %1033 = vmatmul.msk.f32.vlgmr.msrb.gmra.mxu2 %vm108_vm1, %v524_v25  ;;  %v56_v25 = vld [vmem:[#allocation5 + $0x50] sm:$0xff] }
 0x64a   :  { %v635_v26 = vpop.permute.xlu0 %634 }
 0x64c   :  { %1038 = vmatmul.msk.f32.vlgmr.msra.gmra.mxu2 %vm108_vm1, %v635_v26  ;;  %v55_v26 = vld [vmem:[#allocation5 + $0x48] sm:$0xff] }
 0x652   :  { %v724_v29 = vpop.permute.xlu0 %723 }
 0x6ae   :  { %v520_v28 = vpop.f32.mrf.mxu0 }
 0x6af   :  { %1036 = vmatmul.msk.f32.vlgmr.msra.gmra.mxu0 %vm108_vm1, %v520_v28 }
 0x6b7   :  { %1042 = vmatmul.msk.f32.vlgmr.msrb.gmra.mxu0 %vm108_vm1, %v724_v29 }
 0x6bf   :  { %v432_v30 = vpop.f32.mrf.mxu2 }
 0x6c0   :  { %1028 = vmatmul.msk.f32.vlgmr.msra.gmra.mxu1 %vm108_vm1, %v432_v30 }
 0x6c7   :  { %v548_v31 = vpop.f32.mrf.mxu2 }
 0x6c8   :  { %v551_v32 = vsel %vm108_vm1, %v548_v31, -inf }
 0x6c9   :  { %552 = vmax.xlane.f32.xlu1 %v551_v32 }
 0x6cf   :  { %v659_v33 = vpop.f32.mrf.mxu2 }
 0x6d0   :  { %v662_v34 = vsel %vm108_vm1, %v659_v33, -inf }
 0x6d1   :  { %663 = vmax.xlane.f32.xlu0 %v662_v34 }
 0x72c   :  { %v1336_v35 = vpop.f32.mrf.mxu0 }
 0x734   :  { %v748_v36 = vpop.f32.mrf.mxu0 }
 0x735   :  { %v751_v37 = vsel %vm108_vm1, %v748_v36, -inf }
 0x736   :  { %752 = vmax.xlane.f32.xlu2 %v751_v37 }
 0x73c   :  { %v553_v38 = vpop.xlane.xlu1 %552 }
 0x73d   :  { %v554_v39 = vsub.f32 %v548_v31, %v553_v38  ;;  %v455_v49 = vpop.f32.mrf.mxu1  ;;  %v1366_v38 = vld [vmem:[#allocation5 + $0xa4] ss:$0 sm:$0xff] }
 0x73e   :  { %v458_v51 = vadd.f32 %v455_v49, %v369_v50  ;;  %v61_v49 = vld [vmem:[#allocation5 + $0x78] sm:$0xff]  ;;  %v60_v50 = vld [vmem:[#allocation5 + $0x70] sm:$0xff] }
 0x73f   :  { %v555_v40 = vmul.f32 1.442695, %v554_v39 }
 0x740   :  { %v813_v53 = vadd.f32 %v1348_v52, %v458_v51  ;;  %v59_v51 = vld [vmem:[#allocation5 + $0x68] sm:$0xff] }
 0x741   :  { %1098 = vpow2.f32 %v555_v40 }
 0x742   :  { %v815_v54 = vadd.f32 %v813_v53, %v1242_v4  ;;  %v58_v53 = vld [vmem:[#allocation5 + $0x60] sm:$0xff] }
 0x744   :  { %v664_v41 = vpop.xlane.xlu0 %663  ;;  %v817_v55 = vsel %vm75_vm0, %v815_v54, 0.0 }
 0x745   :  { %v665_v42 = vsub.f32 %v659_v33, %v664_v41  ;;  %v1368_v41 = vld [vmem:[#allocation5 + $0xa5] ss:$0 sm:$0xff] }
 0x747   :  { %v1099_v43 = vpop.eup %1098  ;;  %v666_v44 = vmul.f32 1.442695, %v665_v42 }
 0x748   :  { %v557_v45 = vsel %vm108_vm1, %v1099_v43, 0.0 }
 0x749   :  { %1100 = vpow2.f32 %v666_v44  ;;  %558 = vadd.xlane.f32.xlu1 %v557_v45  ;;  %v65_v45 = vld [vmem:[#allocation5 + $0x98] sm:$0xff] }
 0x74a   :  { %922 = vmatpush.msra.mxu0 %v65_v45 }
 0x74f   :  { %v1101_v46 = vpop.eup %1100 }
 0x750   :  { %v668_v47 = vsel %vm108_vm1, %v1101_v46, 0.0 }
 0x751   :  { %669 = vadd.xlane.f32.xlu0 %v668_v47  ;;  %v63_v47 = vld [vmem:[#allocation5 + $0x88] sm:$0xff] }
 0x762   :  { %562 = vrot.lane.b32.xlu1 %v1266_v17, %s1208_s25 }
 0x765   :  { %673 = vrot.lane.b32.xlu0 %v1266_v17, %s1210_s27 }
 0x78c   :  { %818 = vadd.xlane.f32.xlu1 %v817_v55 }
 0x7a9   :  { %v753_v56 = vpop.xlane.xlu2 %752 }
 0x7aa   :  { %v754_v57 = vsub.f32 %v748_v36, %v753_v56  ;;  %v1374_v56 = vld [vmem:[#allocation5 + $0xa2] ss:$0 sm:$0xff] }
 0x7ac   :  { %v755_v59 = vmul.f32 1.442695, %v754_v57 }
 0x7ae   :  { %1102 = vpow2.f32 %v755_v59 }
 0x7b4   :  { %v1103_v60 = vpop.eup %1102 }
 0x7b5   :  { %v757_v58 = vsel %vm108_vm1, %v1103_v60, 0.0 }
 0x7b6   :  { %758 = vadd.xlane.f32.xlu2 %v757_v58 }
 0x7bc   :  { %v559_v61 = vpop.xlane.xlu1 %558 }
 0x7bd   :  { %1104 = vrcp.f32 %v559_v61 }
 0x7c3   :  { %v1105_v63 = vpop.eup %1104 }
 0x7c4   :  { %v670_v62 = vpop.xlane.xlu0 %669  ;;  %v561_v4 = vmul.f32 %v1105_v63, %v1099_v43 }
 0x7c5   :  { %1106 = vrcp.f32 %v670_v62 }
 0x7c6   :  { %1108 = vrcp.f32 %v1213_v5 }
 0x7cb   :  { %v1107_v2 = vpop.eup %1106 }
 0x7cc   :  { %v672_v3 = vmul.f32 %v1107_v2, %v1101_v46  ;;  %v1109_v6 = vpop.eup %1108  ;;  %v64_v46 = vld [vmem:[#allocation5 + $0x90] sm:$0xff]  ;;  %v1075_v2 = vld [vmem:[#allocation5 + $0xa3] ss:$0 sm:$0xff] }
 0x7cd   :  { %v824_v9 = vmul.f32 32.0, %v1109_v6  ;;  %vm828_vm2 = vweird.f32 %v1109_v6  ;;  %923 = vmatpush.msra.mxu0 %v64_v46 }
 0x7ce   :  { %762 = vrot.lane.b32.xlu2 %v1266_v17, %s1212_s29 }
 0x7cf   :  { %v825_v17 = vsub.f32 1.0, %v824_v9  ;;  %924 = vmatpush.msra.mxu0 %v63_v47 }
 0x7d1   :  { %v826_v10 = vmul.f32 %v1109_v6, %v825_v17  ;;  %925 = vmatpush.msra.mxu0 %v62_v48 }
 0x7d3   :  { %v827_v11 = vadd.f32 %v1109_v6, %v826_v10  ;;  %926 = vmatpush.msra.mxu0 %v61_v49 }
 0x7d4   :  { %v563_v0 = vpop.permute.xlu1 %562 }
 0x7d5   :  { %583 = vmatpush.msrb.mxu1 %v563_v0  ;;  %v1358_v12 = vsel %vm828_vm2, %v1109_v6, %v827_v11  ;;  %927 = vmatpush.msra.mxu0 %v60_v50 }
 0x7d6   :  { %1034 = vmatmul.msk.f32.vlgmr.msrb.gmra.mxu1 %vm108_vm1, %v561_v4 }
 0x7d7   :  { %v674_v1 = vpop.permute.xlu0 %673  ;;  %928 = vmatpush.msra.mxu0 %v59_v51 }
 0x7d8   :  { %694 = vmatpush.msra.mxu1 %v674_v1 }
 0x7d9   :  { %929 = vmatpush.msra.mxu0 %v58_v53 }
 0x7da   :  { %806 = vmatpush.msrb.mxu1 %v53_v27  ;;  %v54_v27 = vld [vmem:[#allocation5 + $0x40] sm:$0xff] }
 0x7de   :  { %1039 = vmatmul.msk.f32.vlgmr.msra.gmra.mxu1 %vm108_vm1, %v672_v3 }
 0x7ff   :  { %v819_v13 = vpop.xlane.xlu1 %818 }
 0x800   :  { %v830_v14 = vmul.f32 %v1358_v12, %v819_v13 }
 0x802   :  { %v832_v15 = vsub.f32 %v815_v54, %v830_v14 }
 0x804   :  { %v834_v16 = vmul.f32 %v832_v15, %v832_v15 }
 0x806   :  { %v836_v18 = vsel %vm75_vm0, %v834_v16, 0.0 }
 0x807   :  { %837 = vadd.xlane.f32.xlu2 %v836_v18 }
 0x829   :  { %v759_v19 = vpop.xlane.xlu2 %758 }
 0x82a   :  { %1110 = vrcp.f32 %v759_v19 }
 0x830   :  { %v1111_v20 = vpop.eup %1110 }
 0x831   :  { %v761_v21 = vmul.f32 %v1111_v20, %v1103_v60  ;;  %v763_v7 = vpop.permute.xlu2 %762 }
 0x832   :  { %783 = vmatpush.msrb.mxu2 %v763_v7 }
 0x833   :  { %1043 = vmatmul.msk.f32.vlgmr.msrb.gmra.mxu2 %vm108_vm1, %v761_v21 }
 0x853   :  { %v585_v22 = vpop.f32.mrf.mxu1 }
 0x854   :  { %1035 = vmatmul.msk.f32.vlgmr.msra.gmra.mxu3 %vm108_vm1, %v585_v22 }
 0x855   :  { %893 = vmatpush.msra.mxu3 %v57_v24 }
 0x857   :  { %894 = vmatpush.msra.mxu3 %v56_v25 }
 0x859   :  { %895 = vmatpush.msra.mxu3 %v55_v26 }
 0x85b   :  { %v696_v23 = vpop.f32.mrf.mxu1  ;;  %896 = vmatpush.msra.mxu3 %v54_v27 }
 0x85c   :  { %1040 = vmatmul.msk.f32.vlgmr.msrb.gmra.mxu3 %vm108_vm1, %v696_v23 }
 0x87a   :  { %v838_v28 = vpop.xlane.xlu2 %837 }
 0x87b   :  { %v842_v29 = vmul.f32 %v838_v28, %v1358_v12 }
 0x87d   :  { %v844_v30 = vadd.f32 1e-05, %v842_v29 }
 0x87f   :  { %1112 = vrsqrt.f32 %v844_v30  ;;  %vm852_vm4 = vweird.f32 %v844_v30 }
 0x885   :  { %v1113_v31 = vpop.eup %1112 }
 0x886   :  { %v847_v32 = vmul.f32 %v1113_v31, %v844_v30  ;;  %vm853_vm3 = vweird.f32 %v1113_v31 }
 0x887   :  { %vm854_vm5 = vmor %vm852_vm4, %vm853_vm3 }
 0x888   :  { %v848_v33 = vmul.f32 %v1113_v31, %v847_v32 }
 0x88a   :  { %v849_v34 = vmul.f32 0.5, %v848_v33 }
 0x88c   :  { %v850_v36 = vsub.f32 1.5, %v849_v34 }
 0x88e   :  { %v851_v37 = vmul.f32 %v1113_v31, %v850_v36 }
 0x890   :  { %v855_v39 = vsel %vm854_vm5, %v1113_v31, %v851_v37 }
 0x891   :  { %v866_v40 = vmul.f32 %v855_v39, %v832_v15 }
 0x893   :  { %v869_v42 = vmul.f32 %v1366_v38, %v866_v40 }
 0x895   :  { %v872_v43 = vadd.f32 %v1368_v41, %v869_v42  ;;  %v1076_v42 = vld [vmem:[#allocation5 + $0xa6] ss:$0 sm:$0xff] }
 0x897   :  { %1045 = vmatmul.msk.f32.vlgmr.msra.gmra.mxu3 %vm75_vm0, %v872_v43 }
 0x8b6   :  { %v785_v44 = vpop.f32.mrf.mxu2 }
 0x8b7   :  { %1044 = vmatmul.msk.f32.vlgmr.msrb.gmra.mxu1 %vm108_vm1, %v785_v44 }
 0x8d7   :  { %v608_v54 = vpop.f32.mrf.mxu3 }
 0x8d8   :  { %v632_v58 = vadd.f32 %v1336_v35, %v608_v54 }
 0x8df   :  { %v719_v55 = vpop.f32.mrf.mxu3 }
 0x8e0   :  { %v722_v61 = vadd.f32 %v719_v55, %v632_v58 }
 0x91a   :  { %v898_v57 = vpop.f32.mrf.mxu3 }
 0x91b   :  { %v899_v59 = vadd.f32 %v1374_v56, %v898_v57 }
 0x91d   :  { %v904_v60 = vmax.f32 %v899_v59, 0.0 }
 0x91f   :  { %1047 = vmatmul.msk.f32.vlgmr.msra.gmra.mxu0 %vm907_vm6, %v904_v60 }
 0x934   :  { %v808_v62 = vpop.f32.mrf.mxu1 }
 0x935   :  { %v811_v63 = vadd.f32 %v808_v62, %v722_v61 }
 0x937   :  { %v814_v4 = vadd.f32 %v1348_v52, %v811_v63 }
 0x939   :  { %v816_v0 = vadd.f32 %v814_v4, %v1253_v8 }
 0x93b   :  { %v820_v1 = vsel %vm75_vm0, %v816_v0, 0.0 }
 0x93c   :  { %821 = vadd.xlane.f32.xlu0 %v820_v1 }
 0x99c   :  { %v931_v3 = vpop.f32.mrf.mxu0 }
 0x99d   :  { %v932_v5 = vadd.f32 %v1075_v2, %v931_v3 }
 0x99f   :  { %v937_v6 = vadd.f32 %v932_v5, %v872_v43 }
 0x9a1   :  { %v939_v9 = vsel %vm75_vm0, %v937_v6, 0.0 }
 0x9a2   :  { %940 = vadd.xlane.f32.xlu0 %v939_v9 }
 0x9af   :  { %v822_v17 = vpop.xlane.xlu0 %821 }
 0x9b0   :  { %v831_v35 = vmul.f32 %v1358_v12, %v822_v17 }
 0x9b2   :  { %v833_v10 = vsub.f32 %v816_v0, %v831_v35 }
 0x9b4   :  { %v835_v11 = vmul.f32 %v833_v10, %v833_v10 }
 0x9b6   :  { %v839_v13 = vsel %vm75_vm0, %v835_v11, 0.0 }
 0x9b7   :  { %840 = vadd.xlane.f32.xlu1 %v839_v13 }
 0xa15   :  { %v941_v52 = vpop.xlane.xlu0 %940 }
 0xa16   :  { %v945_v8 = vmul.f32 %v941_v52, %v1358_v12 }
 0xa18   :  { %v947_v14 = vsub.f32 %v937_v6, %v945_v8 }
 0xa1a   :  { %v949_v15 = vmul.f32 %v947_v14, %v947_v14 }
 0xa1c   :  { %v951_v16 = vsel %vm75_vm0, %v949_v15, 0.0 }
 0xa1d   :  { %952 = vadd.xlane.f32.xlu0 %v951_v16 }
 0xa2a   :  { %v841_v18 = vpop.xlane.xlu1 %840 }
 0xa2b   :  { %v843_v19 = vmul.f32 %v841_v18, %v1358_v12 }
 0xa2d   :  { %v845_v20 = vadd.f32 1e-05, %v843_v19 }
 0xa2f   :  { %1114 = vrsqrt.f32 %v845_v20  ;;  %vm862_vm8 = vweird.f32 %v845_v20 }
 0xa35   :  { %v1115_v21 = vpop.eup %1114 }
 0xa36   :  { %v857_v7 = vmul.f32 %v1115_v21, %v845_v20  ;;  %vm863_vm7 = vweird.f32 %v1115_v21 }
 0xa37   :  { %vm864_vm9 = vmor %vm862_vm8, %vm863_vm7 }
 0xa38   :  { %v858_v22 = vmul.f32 %v1115_v21, %v857_v7 }
 0xa3a   :  { %v859_v23 = vmul.f32 0.5, %v858_v22 }
 0xa3c   :  { %v860_v24 = vsub.f32 1.5, %v859_v23 }
 0xa3e   :  { %v861_v25 = vmul.f32 %v1115_v21, %v860_v24 }
 0xa40   :  { %v865_v26 = vsel %vm864_vm9, %v1115_v21, %v861_v25 }
 0xa41   :  { %v867_v27 = vmul.f32 %v865_v26, %v833_v10 }
 0xa43   :  { %v870_v28 = vmul.f32 %v1366_v38, %v867_v27 }
 0xa45   :  { %v873_v29 = vadd.f32 %v1368_v41, %v870_v28  ;;  %v1077_v41 = vld [vmem:[#allocation5 + $0xa7] ss:$0 sm:$0xff] }
 0xa47   :  { %1046 = vmatmul.msk.f32.gmra.mxu3 %vm75_vm0, %v873_v29 }
 0xa90   :  { %v953_v30 = vpop.xlane.xlu0 %952 }
 0xa91   :  { %v957_v31 = vmul.f32 %v953_v30, %v1358_v12 }
 0xa93   :  { %v959_v32 = vadd.f32 1e-05, %v957_v31 }
 0xa95   :  { %1116 = vrsqrt.f32 %v959_v32  ;;  %vm967_vm11 = vweird.f32 %v959_v32 }
 0xa9b   :  { %v1117_v33 = vpop.eup %1116 }
 0xa9c   :  { %v962_v34 = vmul.f32 %v1117_v33, %v959_v32  ;;  %vm968_vm10 = vweird.f32 %v1117_v33 }
 0xa9d   :  { %vm969_vm12 = vmor %vm967_vm11, %vm968_vm10 }
 0xa9e   :  { %v963_v36 = vmul.f32 %v1117_v33, %v962_v34 }
 0xaa0   :  { %v964_v37 = vmul.f32 0.5, %v963_v36 }
 0xaa2   :  { %v965_v39 = vsub.f32 1.5, %v964_v37 }
 0xaa4   :  { %v966_v40 = vmul.f32 %v1117_v33, %v965_v39 }
 0xaa6   :  { %v970_v38 = vsel %vm969_vm12, %v1117_v33, %v966_v40 }
 0xaa7   :  { %v981_v43 = vmul.f32 %v970_v38, %v947_v14 }
 0xaa9   :  { %v984_v44 = vmul.f32 %v1076_v42, %v981_v43 }
 0xaab   :  { %v987_v45 = vadd.f32 %v1077_v41, %v984_v44 }
 0xaad   :  { %989 = vst.msk [vmem:[#allocation7] sm:$0xff] %vm75_vm0, %v987_v45 }
 0xaca   :  { %v901_v46 = vpop.f32.mrf.mxu3 }
 0xacb   :  { %v902_v47 = vadd.f32 %v1374_v56, %v901_v46 }
 0xacd   :  { %v905_v48 = vmax.f32 %v902_v47, 0.0 }
 0xacf   :  { %1048 = vmatmul.msk.f32.gmra.mxu0 %vm907_vm6, %v905_v48 }
 0xb4c   :  { %v934_v49 = vpop.f32.mrf.mxu0 }
 0xb4d   :  { %v935_v50 = vadd.f32 %v1075_v2, %v934_v49 }
 0xb4f   :  { %v938_v51 = vadd.f32 %v935_v50, %v873_v29 }
 0xb51   :  { %v942_v53 = vsel %vm75_vm0, %v938_v51, 0.0 }
 0xb52   :  { %943 = vadd.xlane.f32.xlu1 %v942_v53 }
 0xbc5   :  { %v944_v54 = vpop.xlane.xlu1 %943 }
 0xbc6   :  { %v946_v55 = vmul.f32 %v944_v54, %v1358_v12 }
 0xbc8   :  { %v948_v57 = vsub.f32 %v938_v51, %v946_v55 }
 0xbca   :  { %v950_v59 = vmul.f32 %v948_v57, %v948_v57 }
 0xbcc   :  { %v954_v60 = vsel %vm75_vm0, %v950_v59, 0.0 }
 0xbcd   :  { %955 = vadd.xlane.f32.xlu2 %v954_v60 }
 0xc40   :  { %v956_v58 = vpop.xlane.xlu2 %955 }
 0xc41   :  { %v958_v56 = vmul.f32 %v956_v58, %v1358_v12 }
 0xc43   :  { %v960_v61 = vadd.f32 1e-05, %v958_v56 }
 0xc45   :  { %1118 = vrsqrt.f32 %v960_v61  ;;  %vm977_vm14 = vweird.f32 %v960_v61 }
 0xc4b   :  { %v1119_v62 = vpop.eup %1118 }
 0xc4c   :  { %v972_v63 = vmul.f32 %v1119_v62, %v960_v61  ;;  %vm978_vm13 = vweird.f32 %v1119_v62 }
 0xc4d   :  { %vm979_vm15 = vmor %vm977_vm14, %vm978_vm13 }
 0xc4e   :  { %v973_v4 = vmul.f32 %v1119_v62, %v972_v63 }
 0xc50   :  { %v974_v0 = vmul.f32 0.5, %v973_v4 }
 0xc52   :  { %v975_v1 = vsub.f32 1.5, %v974_v0 }
 0xc54   :  { %v976_v2 = vmul.f32 %v1119_v62, %v975_v1 }
 0xc56   :  { %v980_v3 = vsel %vm979_vm15, %v1119_v62, %v976_v2 }
 0xc57   :  { %v982_v5 = vmul.f32 %v980_v3, %v948_v57 }
 0xc59   :  { %v985_v12 = vmul.f32 %v1076_v42, %v982_v5 }
 0xc5b   :  { %v988_v6 = vadd.f32 %v1077_v41, %v985_v12 }
 0xc5d   :  { %990 = vst.msk [vmem:[#allocation7 + $0x8] sm:$0xff] %vm75_vm0, %v988_v6 }
 0xc5e   :  { %1003 = dma.vmem_to_hbm [thread:$0]  %s996_s3, 256, %s998_s6, [#allocation4], %s1199_s17, %s1199_s17, %s1200_s18  }
 0xc5f   :  { %1196 = dma.done.wait [#allocation4], 256  }
 0xc60   :  { %1197 = vsyncadd [#allocation4], 4294967040 }
 0xc61   :  { %1008 = vsyncpa [#allocation3], 1 }
 0xc62   :  { %1009 = vsyncpa [#allocation6], 1 }
 0xc63   :  { %1010 = vsyncpa [#allocation4], 1 }

</bundles_post_ra>
